<compile_context>
chip_gen: v7x
topology: tpu7x:2x2x1
jax: 0.10.0
libtpu: 0.0.40
codegen_flags: <defaults>
</compile_context>

<pallas_src>
import functools

import jax
import jax.numpy as jnp
from jax.experimental import pallas as pl
from jax.experimental.pallas import tpu as pltpu

LANES = 128
MAX_TILE_ROWS = 8192                   # 8192 * 128 * 4B = 4 MiB per input block
VMEM_LIMIT_BYTES = 32 * 1024 * 1024    # 16 MiB double-buffered inputs + headroom


def _core_split():
    """Return (ncores, leading-axis dimension semantics) for the current TPU."""
    try:
        kind = jax.devices()[0].device_kind.lower()
    except Exception:
        kind = ""
    if "v7" in kind or "tpu7" in kind:
        # 2 TensorCores per chip on v7x; CORE_PARALLEL actually shards the
        # leading grid axis across them (plain "parallel" may not).
        return 2, getattr(pltpu, "CORE_PARALLEL", pltpu.PARALLEL)
    # v5e / v6e (and unknown fallback): single TensorCore, no core work split.
    return 1, pltpu.ARBITRARY


def _mse_kernel(x_ref, y_ref, o_ref, acc_ref, *,
                rows_valid, tiles_per_core, inv_n, needs_mask):
    t = pl.program_id(1)

    # Init the resident accumulator / output block at the start of each core's
    # reduction sweep.
    @pl.when(t == 0)
    def _():
        acc_ref[...] = jnp.zeros_like(acc_ref)
        o_ref[0, 0] = jnp.float32(0.0)

    d = x_ref[...].astype(jnp.float32) - y_ref[...].astype(jnp.float32)
    sq = d * d

    if needs_mask:
        # Mask rows beyond the true row count (partial boundary tile and/or the
        # other core's clamped out-of-range tail tiles). Uses *logical* row
        # indices, so it is correct even though out-of-range block indices are
        # clamped by the index_map. jnp.where discards any garbage/NaN bytes in
        # the unfilled part of a partial block. HBM-bound kernel, so this
        # iota/compare/select is free VPU filler.
        tile_rows = x_ref.shape[0]
        base_row = (pl.program_id(0) * tiles_per_core + t) * tile_rows
        row_ids = base_row + jax.lax.broadcasted_iota(jnp.int32, sq.shape, 0)
        sq = jnp.where(row_ids < rows_valid, sq, 0.0)

    # Lane/sublane-preserving partial reduce: (tile_rows, 128) -> (8, 128).
    # Stays on the VPU; no per-step cross-lane reduce, no scalar RMW chain.
    acc_ref[...] += jnp.sum(sq.reshape(-1, 8, LANES), axis=0)

    # Finalize: single cross-lane reduce + 1/N scale, once per core.
    @pl.when(t == pl.num_programs(1) - 1)
    def _():
        o_ref[0, 0] = jnp.sum(acc_ref[...]) * jnp.float32(inv_n)


def reconstruction_loss(inputs, reconstructions, *, max_tile_rows=MAX_TILE_ROWS):
    """MSE(inputs, reconstructions) with 'mean' reduction, like nn.MSELoss()."""
    assert inputs.shape == reconstructions.shape, "shapes must match"
    n = inputs.size
    assert n > 0
    inv_n = 1.0 / float(n)

    x = inputs.reshape(-1)
    y = reconstructions.reshape(-1)

    rows_main = n // LANES
    tail = n - rows_main * LANES

    # Ragged tail (< 128 elements): tiny static slice + sum in the wrapper —
    # no full-tensor jnp.pad, no extra full HBM read+write of both operands.
    tail_loss = jnp.float32(0.0)
    if tail:
        xt = x[rows_main * LANES:].astype(jnp.float32)
        yt = y[rows_main * LANES:].astype(jnp.float32)
        tail_loss = jnp.sum((xt - yt) ** 2) * jnp.float32(inv_n)

    if rows_main == 0:
        # Degenerate tiny input (< 128 elements): nothing left for the kernel.
        return tail_loss

    if tail:
        x = x[: rows_main * LANES]
        y = y[: rows_main * LANES]
    x2 = x.reshape(rows_main, LANES)
    y2 = y.reshape(rows_main, LANES)

    # TODO(synk): tile_rows rounding to 8 is f32-specific; round to 16/32 for
    # bf16/int8 inputs if those are ever passed.
    tile_rows = min(max_tile_rows, ((rows_main + 7) // 8) * 8)
    n_tiles = pl.cdiv(rows_main, tile_rows)

    ncores, core_sem = _core_split()
    ncores = min(ncores, n_tiles)          # never issue fully-masked duplicate tiles
    if ncores == 1:
        core_sem = pltpu.ARBITRARY
    tiles_per_core = pl.cdiv(n_tiles, ncores)
    needs_mask = ncores * tiles_per_core * tile_rows > rows_main

    def in_map(c, t):
        # Clamp so an out-of-range tail block stays a legal DMA; its
        # contribution is zeroed by the in-kernel logical-row mask.
        return (jnp.minimum(c * tiles_per_core + t, n_tiles - 1), 0)

    kernel = functools.partial(
        _mse_kernel,
        rows_valid=rows_main,
        tiles_per_core=tiles_per_core,
        inv_n=inv_n,
        needs_mask=needs_mask,
    )

    bytes_per_input = rows_main * LANES * jnp.dtype(inputs.dtype).itemsize
    partials = pl.pallas_call(
        kernel,
        out_shape=jax.ShapeDtypeStruct((ncores, 1), jnp.float32),
        grid_spec=pltpu.PrefetchScalarGridSpec(
            num_scalar_prefetch=0,
            grid=(ncores, tiles_per_core),
            in_specs=[
                pl.BlockSpec((tile_rows, LANES), in_map),
                pl.BlockSpec((tile_rows, LANES), in_map),
            ],
            out_specs=pl.BlockSpec(
                (1, 1), lambda c, t: (c, 0), memory_space=pltpu.SMEM
            ),
            scratch_shapes=[pltpu.VMEM((8, LANES), jnp.float32)],
        ),
        compiler_params=pltpu.CompilerParams(
            # Leading axis: split across TensorCores only on 2-TC chips (v7x);
            # trailing axis is the sequential reduction over row tiles.
            dimension_semantics=(core_sem, pltpu.ARBITRARY),
            vmem_limit_bytes=VMEM_LIMIT_BYTES,
        ),
        cost_estimate=pl.CostEstimate(
            flops=3 * rows_main * LANES,
            transcendentals=0,
            bytes_accessed=2 * bytes_per_input + 4 * ncores,
        ),
    )(x2, y2)

    # Per-core partials are already scaled by 1/N; sum them and add the tail.
    return jnp.sum(partials) + tail_loss


if __name__ == "__main__":
    key = jax.random.PRNGKey(0)

    # 1) Main path: NCHW images, numel % 128 == 0 (free reshape, no slicing).
    k1, k2 = jax.random.split(key)
    x = jax.random.normal(k1, (2, 4, 16, 16), dtype=jnp.float32)
    r = jax.random.normal(k2, (2, 4, 16, 16), dtype=jnp.float32)
    loss = reconstruction_loss(x, r)
    jax.block_until_ready(loss)
    ref = jnp.mean((x - r) ** 2)
    assert jnp.allclose(loss, ref, rtol=1e-5, atol=1e-6), (loss, ref)

    # 2) Ragged path: numel % 128 != 0 (wrapper-side tail, partial row block).
    k3, k4 = jax.random.split(k1)
    x2 = jax.random.normal(k3, (2, 3, 10, 10), dtype=jnp.float32)
    r2 = jax.random.normal(k4, (2, 3, 10, 10), dtype=jnp.float32)
    loss2 = reconstruction_loss(x2, r2)
    jax.block_until_ready(loss2)
    ref2 = jnp.mean((x2 - r2) ** 2)
    assert jnp.allclose(loss2, ref2, rtol=1e-5, atol=1e-6), (loss2, ref2)

    # 3) Multi-tile reduction path (grid > 1, mask-free) via small tiles.
    k5, k6 = jax.random.split(k2)
    x3 = jax.random.normal(k5, (2, 8, 32, 32), dtype=jnp.float32)
    r3 = jax.random.normal(k6, (2, 8, 32, 32), dtype=jnp.float32)
    loss3 = reconstruction_loss(x3, r3, max_tile_rows=16)
    jax.block_until_ready(loss3)
    ref3 = jnp.mean((x3 - r3) ** 2)
    assert jnp.allclose(loss3, ref3, rtol=1e-5, atol=1e-6), (loss3, ref3)

    print("KERNEL_OK")
</pallas_src>

<mosaic_0001>
module attributes {stable_mosaic.version = 11 : i64} {
  func.func @_mse_kernel(%arg0: i32, %arg1: i32, %arg2: memref<16x128xf32, #tpu.memory_space<vmem>>, %arg3: memref<16x128xf32, #tpu.memory_space<vmem>>, %arg4: memref<1x1xf32, #tpu.memory_space<smem>>, %arg5: memref<8x128xf32, #tpu.memory_space<vmem>>) attributes {dimension_semantics = [#tpu.dimension_semantics<arbitrary>, #tpu.dimension_semantics<arbitrary>], iteration_bounds = array<i64: 1, 1>, scalar_prefetch = 0 : i64, scratch_operands = 1 : i64, tpu.core_type = #tpu.core_type<tc>, window_params = [{transform_indices = @transform_0, window_bounds = array<i64: 16, 128>}, {transform_indices = @transform_1, window_bounds = array<i64: 16, 128>}, {transform_indices = @transform_2, window_bounds = array<i64: 1, 1>}]} {
    %c0_i32 = arith.constant 0 : i32
    %0 = arith.cmpi eq, %arg1, %c0_i32 : i32
    %1 = arith.extui %0 : i1 to i32
    %c0_i32_0 = arith.constant 0 : i32
    %2 = arith.cmpi ne, %1, %c0_i32_0 : i32
    scf.if %2 {
      %cst_10 = arith.constant 0.000000e+00 : f32
      %15 = vector.broadcast %cst_10 : f32 to vector<8x128xf32>
      %c0_11 = arith.constant 0 : index
      %c0_12 = arith.constant 0 : index
      %16 = vector.load %arg5[%c0_11, %c0_12] : memref<8x128xf32, #tpu.memory_space<vmem>>, vector<8x128xf32>
      tpu.vector_store %arg5[%c0_11, %c0_12], %15 {strides = array<i32>} : memref<8x128xf32, #tpu.memory_space<vmem>>, vector<8x128xf32>,
      %cst_13 = arith.constant 0.000000e+00 : f32
      %c0_14 = arith.constant 0 : index
      %c0_15 = arith.constant 0 : index
      %17 = memref.load %arg4[%c0_14, %c0_15] : memref<1x1xf32, #tpu.memory_space<smem>>
      memref.store %cst_13, %arg4[%c0_14, %c0_15] : memref<1x1xf32, #tpu.memory_space<smem>>
    } else {
    }
    %c0 = arith.constant 0 : index
    %c0_1 = arith.constant 0 : index
    %3 = vector.load %arg2[%c0, %c0_1] : memref<16x128xf32, #tpu.memory_space<vmem>>, vector<16x128xf32>
    %c0_2 = arith.constant 0 : index
    %c0_3 = arith.constant 0 : index
    %4 = vector.load %arg3[%c0_2, %c0_3] : memref<16x128xf32, #tpu.memory_space<vmem>>, vector<16x128xf32>
    %5 = arith.subf %3, %4 : vector<16x128xf32>
    %6 = arith.mulf %5, %5 : vector<16x128xf32>
    %c0_4 = arith.constant 0 : index
    %c0_5 = arith.constant 0 : index
    %7 = vector.load %arg5[%c0_4, %c0_5] : memref<8x128xf32, #tpu.memory_space<vmem>>, vector<8x128xf32>
    %8 = vector.shape_cast %6 : vector<16x128xf32> to vector<2x8x128xf32>
    %cst = arith.constant dense<0.000000e+00> : vector<8x128xf32>
    %9 = vector.multi_reduction <add>, %8, %cst [0] : vector<2x8x128xf32> to vector<8x128xf32>
    %10 = arith.addf %7, %9 : vector<8x128xf32>
    %c0_6 = arith.constant 0 : index
    %c0_7 = arith.constant 0 : index
    %11 = vector.load %arg5[%c0_6, %c0_7] : memref<8x128xf32, #tpu.memory_space<vmem>>, vector<8x128xf32>
    tpu.vector_store %arg5[%c0_6, %c0_7], %10 {strides = array<i32>} : memref<8x128xf32, #tpu.memory_space<vmem>>, vector<8x128xf32>,
    %c0_i32_8 = arith.constant 0 : i32
    %12 = arith.cmpi eq, %arg1, %c0_i32_8 : i32
    %13 = arith.extui %12 : i1 to i32
    %c0_i32_9 = arith.constant 0 : i32
    %14 = arith.cmpi ne, %13, %c0_i32_9 : i32
    scf.if %14 {
      %c0_10 = arith.constant 0 : index
      %c0_11 = arith.constant 0 : index
      %15 = vector.load %arg5[%c0_10, %c0_11] : memref<8x128xf32, #tpu.memory_space<vmem>>, vector<8x128xf32>
      %16 = vector.shape_cast %15 : vector<8x128xf32> to vector<1x8x128xf32>
      %cst_12 = arith.constant dense<0.000000e+00> : vector<1xf32>
      %17 = vector.multi_reduction <add>, %16, %cst_12 [1, 2] : vector<1x8x128xf32> to vector<1xf32>
      %18 = vector.shape_cast %17 : vector<1xf32> to vector<1x1x1xf32>
      %19 = vector.extract %18[0, 0, 0] : f32 from vector<1x1x1xf32>
      %cst_13 = arith.constant 4.8828125E-4 : f32
      %20 = arith.mulf %19, %cst_13 : f32
      %c0_14 = arith.constant 0 : index
      %c0_15 = arith.constant 0 : index
      %21 = memref.load %arg4[%c0_14, %c0_15] : memref<1x1xf32, #tpu.memory_space<smem>>
      memref.store %20, %arg4[%c0_14, %c0_15] : memref<1x1xf32, #tpu.memory_space<smem>>
    } else {
    }
    return
  }
  func.func @transform_0(%arg0: i32, %arg1: i32) -> (i32, i32) {
    %c1_i32 = arith.constant 1 : i32
    %0 = arith.muli %arg0, %c1_i32 : i32
    %1 = arith.addi %0, %arg1 : i32
    %c0_i32 = arith.constant 0 : i32
    %2 = arith.minsi %1, %c0_i32 : i32
    %c0_i32_0 = arith.constant 0 : i32
    %c0_i32_1 = arith.constant 0 : i32
    return %2, %c0_i32_0 : i32, i32
  }
  func.func @transform_1(%arg0: i32, %arg1: i32) -> (i32, i32) {
    %c1_i32 = arith.constant 1 : i32
    %0 = arith.muli %arg0, %c1_i32 : i32
    %1 = arith.addi %0, %arg1 : i32
    %c0_i32 = arith.constant 0 : i32
    %2 = arith.minsi %1, %c0_i32 : i32
    %c0_i32_0 = arith.constant 0 : i32
    %c0_i32_1 = arith.constant 0 : i32
    return %2, %c0_i32_0 : i32, i32
  }
  func.func @transform_2(%arg0: i32, %arg1: i32) -> (i32, i32) {
    %c0_i32 = arith.constant 0 : i32
    %c0_i32_0 = arith.constant 0 : i32
    return %arg0, %c0_i32 : i32, i32
  }
}

</mosaic_0001>

<bundles_post_ra>
// kernel: tpu_custom_call.1
= control target key start
LH: loop header
LB: loop body
LE: loop exit
PB: predicated region body
PF: predicated region fallthrough
CT: control target
= control target key end

     0   :  { %7 = vsyncpa [#allocation4], 0  ;;  %s238_s0 = inlined_call_operand.hbm [shape: f32[16,128], index: 0, kind: input, shape index: {}]   ;;  %s239_s1 = inlined_call_operand.hbm [shape: f32[16,128], index: 1, kind: input, shape index: {}]   ;;  %s240_s2 = inlined_call_operand.hbm [shape: f32[1,1], index: 2, kind: output, shape index: {}]  }
   0x1   :  { %8 = vsyncpa [#allocation7], 0 }
   0x2   :  { %9 = vsyncpa [#allocation5], 0  ;;  %s182_s9 = smov [#allocation3]   ;;  %s122_s13 = scalar_lea.hbm %s238_s0, 256 }
   0x3   :  { %s21_s10 = sshll.u32 %s182_s9, 4  ;;  %p123_p0 = scmp.ne.s32.totalorder %s238_s0, %s122_s13  ;;  %s22_s10 = int_to_ptr.vmem [resolvable:$true] %s21_s10 }
   0x4   :  { %p126_p1 = scmp.lt.u32.totalorder %s122_s13, %s238_s0 }
   0x6   :  { %p128_p2 = pnand %p126_p1, %p123_p0 }
   0x8   :  { %131 = shalt.err (!%p128_p2)
}
   0x9   :  { %s132_s18 = scalar_lea.vmem %s22_s10, 256  ;;  %p137_p4 = scmp.lt.s32.totalorder %s22_s10, %s22_s10 }
   0xa   :  { %p133_p3 = scmp.ne.s32.totalorder %s22_s10, %s132_s18  ;;  %p138_p5 = scmp.lt.s32.totalorder %s132_s18, %s132_s18 }
   0xc   :  { %p139_p6 = por %p138_p5, %p137_p4 }
   0xe   :  { %p140_p7 = pnand %p139_p6, %p133_p3 }
  0x10   :  { %143 = shalt.err (!%p140_p7)
}
  0x11   :  { %s183_s19 = smov 128   ;;  %s184_s20 = smov 8  }
  0x12   :  { %27 = dma.hbm_to_vmem [thread:$0]  %s238_s0, 256, %s22_s10, [#allocation4], %s183_s19, %s183_s19, %s184_s20  }
  0x13   :  { %s185_s23 = smov [#allocation6]   ;;  %s144_s27 = scalar_lea.hbm %s239_s1, 256 }
  0x14   :  { %s39_s24 = sshll.u32 %s185_s23, 4  ;;  %p145_p8 = scmp.ne.s32.totalorder %s239_s1, %s144_s27  ;;  %s40_s24 = int_to_ptr.vmem [resolvable:$true] %s39_s24 }
  0x15   :  { %p148_p9 = scmp.lt.u32.totalorder %s144_s27, %s239_s1 }
  0x17   :  { %p150_p10 = pnand %p148_p9, %p145_p8 }
  0x19   :  { %153 = shalt.err (!%p150_p10)
}
  0x1a   :  { %s154_s4 = scalar_lea.vmem %s40_s24, 256  ;;  %p159_p12 = scmp.lt.s32.totalorder %s40_s24, %s40_s24 }
  0x1b   :  { %p155_p11 = scmp.ne.s32.totalorder %s40_s24, %s154_s4  ;;  %p160_p13 = scmp.lt.s32.totalorder %s154_s4, %s154_s4 }
  0x1d   :  { %p161_p0 = por %p160_p13, %p159_p12 }
  0x1f   :  { %p162_p1 = pnand %p161_p0, %p155_p11 }
  0x21   :  { %165 = shalt.err (!%p162_p1)
}
  0x22   :  { %45 = dma.hbm_to_vmem [thread:$0]  %s239_s1, 256, %s40_s24, [#allocation7], %s183_s19, %s183_s19, %s184_s20  }
  0x23   :  { %176 = dma.done.wait [#allocation4], 256  }
  0x24   :  { %177 = vsyncadd [#allocation4], 4294967040 }
  0x25   :  { %178 = dma.done.wait [#allocation7], 256  }
  0x26   :  { %179 = vsyncadd [#allocation7], 4294967040  ;;  %v67_v0 = vld [vmem:[#allocation3] sm:$0xff]  ;;  %v68_v1 = vld [vmem:[#allocation3 + $0x8] sm:$0xff]  ;;  %s166_s9 = scalar_lea.hbm %s240_s2, 16 }
  0x27   :  { %v69_v2 = vld [vmem:[#allocation6] sm:$0xff]  ;;  %v70_v3 = vld [vmem:[#allocation6 + $0x8] sm:$0xff]  ;;  %p167_p2 = scmp.ne.s32.totalorder %s240_s2, %s166_s9  ;;  %p170_p3 = scmp.lt.u32.totalorder %s166_s9, %s240_s2 }
  0x28   :  { %v71_v4 = vsub.f32 %v67_v0, %v69_v2  ;;  %v72_v5 = vsub.f32 %v68_v1, %v70_v3 }
  0x29   :  { %p172_p4 = pnand %p170_p3, %p167_p2 }
  0x2a   :  { %v73_v6 = vmul.f32 %v71_v4, %v71_v4  ;;  %v74_v7 = vmul.f32 %v72_v5, %v72_v5 }
  0x2c   :  { %v76_v8 = vadd.f32 %v74_v7, %v73_v6 }
  0x2e   :  { %83 = vadd.xlane.f32.xlu0 %v76_v8 }
  0xbb   :  { %v84_v9 = vpop.xlane.xlu0 %83 }
  0xbc   :  { %v85_v10 = vrot.slane %v84_v9, 4 }
  0xbe   :  { %v86_v11 = vadd.f32 %v85_v10, %v84_v9 }
  0xc0   :  { %v87_v12 = vrot.slane %v86_v11, 2 }
  0xc2   :  { %v88_v13 = vadd.f32 %v87_v12, %v86_v11 }
  0xc4   :  { %v89_v14 = vrot.slane %v88_v13, 1 }
  0xc6   :  { %v90_v15 = vadd.f32 %v89_v14, %v88_v13 }
  0xc8   :  { %114 = vpush %v90_v15 }
  0xf9   :  { %s115_s1 = spop %114 }
  0xfa   :  { %s92_s6 = smul.f32 0.00048828125, %s115_s1 }
  0xfc   :  { %94 = sst [smem:[#allocation8]] %s92_s6 }
  0xfd   :  { %175 = shalt.err (!%p172_p4)
}
  0xfe   :  { %s186_s14 = smov [#allocation8]  }
  0xff   :  { %102 = dma.smem_to_hbm %s186_s14, 16, %s240_s2, [#allocation5]  }
 0x100   :  { %180 = dma.done.wait [#allocation5], 16  }
 0x101   :  { %181 = vsyncadd [#allocation5], 4294967280 }
 0x102   :  { %106 = sfence }
 0x103   :  { %107 = vsyncpa [#allocation4], 1 }
 0x104   :  { %108 = vsyncpa [#allocation7], 1 }
 0x105   :  { %109 = vsyncpa [#allocation5], 1 }

</bundles_post_ra>
